<compile_context>
chip_gen: v7x
topology: tpu7x:2x2x1
jax: 0.10.0
libtpu: 0.0.40
codegen_flags: <defaults>
</compile_context>

<pallas_src>
import math
from typing import NamedTuple

import jax
import jax.numpy as jnp
from jax.experimental import pallas as pl
from jax.experimental.pallas import tpu as pltpu


def _round_up(n, m):
    return ((n + m - 1) // m) * m


# ---------------------------------------------------------------------------
# Kernels
# ---------------------------------------------------------------------------

def _harmonic_kernel_k1(x_ref, w_ref, bs_ref, o_ref):
    """Single K-tile grid: no scratch accumulator, fully fused epilogue."""
    y = jnp.dot(x_ref[...], w_ref[...], preferred_element_type=jnp.float32)
    y = y + bs_ref[0:1, :]                       # bias (1, tn) broadcast
    o_ref[...] = (jnp.sin(y * bs_ref[1:2, :]) + 0.1 * y).astype(o_ref.dtype)


def _harmonic_kernel(x_ref, w_ref, bs_ref, o_ref, acc_ref):
    """Multi K-tile grid: f32 accumulator, epilogue only at the last K step.

    The current partial product stays in a local value so the last step never
    does a scratch read-modify-write before the epilogue.
    """
    k = pl.program_id(2)
    last = pl.num_programs(2) - 1
    part = jnp.dot(x_ref[...], w_ref[...], preferred_element_type=jnp.float32)

    @pl.when(k == 0)
    def _():
        acc_ref[...] = part

    @pl.when(jnp.logical_and(k > 0, k < last))
    def _():
        acc_ref[...] += part

    @pl.when(k == last)
    def _():
        y = acc_ref[...] + part + bs_ref[0:1, :]
        o_ref[...] = (jnp.sin(y * bs_ref[1:2, :]) + 0.1 * y).astype(o_ref.dtype)


# ---------------------------------------------------------------------------
# Parameter preparation (done once, outside the hot path)
# ---------------------------------------------------------------------------

class HarmonicParams(NamedTuple):
    w_t: jax.Array          # (Inp, Outp) pre-transposed, pre-padded, stream dtype
    bs: jax.Array           # (2, Outp) f32: row 0 = bias, row 1 = 2*pi/freq
    in_features: int
    out_features: int
    tn: int
    tk: int


def prepare_harmonic_params(w, b, freq, *, tn=256, tk=512,
                            stream_dtype=jnp.bfloat16):
    """Pad / transpose / cast the weights once so the forward pass never
    re-materializes them in HBM.  w: (Out, In), b: (Out,), freq: (Out,)."""
    Out, In = w.shape
    tn = min(_round_up(Out, 128), tn)            # lane-dense output tiles
    tk = min(_round_up(In, 128), tk)
    Outp = _round_up(Out, tn)
    Inp = _round_up(In, tk)

    w_t = jnp.pad(jnp.asarray(w, jnp.float32).T,
                  ((0, Inp - In), (0, Outp - Out))).astype(stream_dtype)
    bias_p = jnp.pad(jnp.asarray(b, jnp.float32), (0, Outp - Out))
    scale = (2.0 * math.pi) / jnp.asarray(freq, jnp.float32)
    scale_p = jnp.pad(scale, (0, Outp - Out), constant_values=1.0)
    bs = jnp.stack([bias_p, scale_p], axis=0)    # (2, Outp) f32

    return HarmonicParams(w_t, bs, In, Out, tn, tk)


# ---------------------------------------------------------------------------
# Forward wrapper
# ---------------------------------------------------------------------------

_VMEM_CAP_BYTES = 48 * 1024 * 1024   # keep tile footprint safe on v7x (64 MiB/TC)


def _tile_footprint_bytes(tm, tn, tk, op_bytes):
    # double-buffered x / W / out tiles + f32 accumulator + bias/scale blocks
    return (2 * tm * tk * op_bytes
            + 2 * tk * tn * op_bytes
            + 2 * tm * tn * 4
            + tm * tn * 4
            + 2 * 2 * tn * 4)


def harmonic_layer(x, params: HarmonicParams, *, tm=512):
    """x: (B, In) f32.  Returns (B, Out) f32."""
    B, In = x.shape
    assert In == params.in_features, "input feature mismatch"
    Inp, Outp = params.w_t.shape
    tn, tk = params.tn, params.tk
    op_bytes = params.w_t.dtype.itemsize

    # tm multiple of 16 (bf16 sublane packing; also a multiple of 8 for f32).
    tm = min(_round_up(B, 16), tm)
    while _tile_footprint_bytes(tm, tn, tk, op_bytes) > _VMEM_CAP_BYTES and tm > 16:
        tm = max(16, tm // 2)

    Bp = _round_up(B, tm)
    xp = jnp.pad(x, ((0, Bp - B), (0, Inp - In))).astype(params.w_t.dtype)

    grid = (Bp // tm, Outp // tn, Inp // tk)
    nk = grid[2]

    in_specs = [
        pl.BlockSpec((tm, tk), lambda i, j, k: (i, k)),   # x tile (stream dtype)
        pl.BlockSpec((tk, tn), lambda i, j, k: (k, j)),   # W^T tile (stream dtype)
        pl.BlockSpec((2, tn), lambda i, j, k: (0, j)),    # fused [bias; scale]
    ]
    out_spec = pl.BlockSpec((tm, tn), lambda i, j, k: (i, j))

    # Cost estimate with padded dims and per-tile re-streaming of X / W.
    cost = pl.CostEstimate(
        flops=2 * Bp * Inp * Outp,
        transcendentals=Bp * Outp,
        bytes_accessed=int(
            Bp * Inp * op_bytes * (Outp // tn)      # x streamed once per j block
            + Inp * Outp * op_bytes * (Bp // tm)    # W streamed once per i block
            + 2 * Outp * 4                          # bias / scale
            + Bp * Outp * 4                         # output
        ),
    )

    footprint = _tile_footprint_bytes(tm, tn, tk, op_bytes)
    vmem_limit = int(min(_VMEM_CAP_BYTES, max(2 * footprint, 16 * 1024 * 1024)))

    if nk == 1:
        kernel, scratch = _harmonic_kernel_k1, []
    else:
        kernel, scratch = _harmonic_kernel, [pltpu.VMEM((tm, tn), jnp.float32)]

    out_padded = pl.pallas_call(
        kernel,
        out_shape=jax.ShapeDtypeStruct((Bp, Outp), jnp.float32),
        grid_spec=pltpu.PrefetchScalarGridSpec(
            num_scalar_prefetch=0,
            grid=grid,
            in_specs=in_specs,
            out_specs=out_spec,
            scratch_shapes=scratch,
        ),
        compiler_params=pltpu.CompilerParams(
            dimension_semantics=("parallel", "parallel", "arbitrary"),
            vmem_limit_bytes=vmem_limit,
        ),
        cost_estimate=cost,
    )(xp, params.w_t, params.bs)

    return out_padded[:B, :params.out_features]


# ---------------------------------------------------------------------------
# Reference init / forward (pure JAX, mirrors the PyTorch module)
# ---------------------------------------------------------------------------

def init_harmonic_params(key, input_size, output_size,
                         base_freq=1.0, max_freq=10.0):
    """Deterministic re-implementation of HarmonicLayer.__init__."""
    freqs = jnp.minimum(
        base_freq * (jnp.arange(output_size, dtype=jnp.float32) + 1.0),
        max_freq)
    freq_scale = 1.0 / jnp.sqrt(freqs)
    freq_scale = freq_scale / jnp.mean(freq_scale)
    bound = 1.0 / math.sqrt(input_size)
    kw, kb = jax.random.split(key)
    w = jax.random.uniform(kw, (output_size, input_size), jnp.float32,
                           minval=-bound, maxval=bound)
    w = w * freq_scale[:, None]
    b = jax.random.uniform(kb, (output_size,), jnp.float32,
                           minval=-bound, maxval=bound)
    b = b * freq_scale
    return w, b, freqs


def harmonic_ref(x, w, b, freq):
    """Exact reference matching the PyTorch forward."""
    y = x @ w.T + b
    return jnp.sin(2.0 * math.pi * (y / freq[None, :])) + 0.1 * y


def harmonic_ref_rounded(x, w, b, freq, dtype):
    """Reference with operands rounded to the streaming dtype (validates the
    kernel structure independently of the bf16 cast)."""
    xr = x.astype(dtype).astype(jnp.float32)
    wr = w.astype(dtype).astype(jnp.float32)
    y = xr @ wr.T + b
    return jnp.sin(2.0 * math.pi * (y / freq[None, :])) + 0.1 * y


if __name__ == "__main__":
    key = jax.random.PRNGKey(0)

    # --- small shape, f32 streaming: exact-semantics check -----------------
    k_param, k_x = jax.random.split(key)
    batch, input_size, output_size = 8, 32, 16
    w, b, freqs = init_harmonic_params(k_param, input_size, output_size)
    x = jax.random.normal(k_x, (batch, input_size), dtype=jnp.float32)

    params_f32 = prepare_harmonic_params(w, b, freqs, stream_dtype=jnp.float32)
    out = jax.block_until_ready(harmonic_layer(x, params_f32))
    ref = harmonic_ref(x, w, b, freqs)
    assert out.shape == (batch, output_size)
    assert jnp.allclose(out, ref, atol=2e-5, rtol=1e-5), "f32 small-shape mismatch"

    # --- small shape, default bf16 streaming (f32 accumulation) ------------
    params_bf = prepare_harmonic_params(w, b, freqs)   # bf16 stream by default
    out_bf = jax.block_until_ready(harmonic_layer(x, params_bf))
    ref_bf = harmonic_ref_rounded(x, w, b, freqs, jnp.bfloat16)
    assert jnp.allclose(out_bf, ref_bf, atol=1e-3, rtol=1e-3), "bf16 small mismatch"

    # --- medium shape: multi-tile (M, N, K) grid, Out padding, bf16 stream --
    k_param2, k_x2 = jax.random.split(jax.random.PRNGKey(1))
    batch2, in2, out2 = 256, 1024, 384
    w2, b2, freqs2 = init_harmonic_params(k_param2, in2, out2)
    x2 = jax.random.normal(k_x2, (batch2, in2), dtype=jnp.float32)

    params2 = prepare_harmonic_params(w2, b2, freqs2)  # tk=512 -> 2 K tiles
    out_m = jax.block_until_ready(harmonic_layer(x2, params2))
    ref_m = harmonic_ref_rounded(x2, w2, b2, freqs2, jnp.bfloat16)
    assert out_m.shape == (batch2, out2)
    assert jnp.allclose(out_m, ref_m, atol=2e-3, rtol=2e-3), "tiled bf16 mismatch"

    print("KERNEL_OK")
</pallas_src>

<mosaic_0001>
module attributes {stable_mosaic.version = 11 : i64} {
  func.func @_harmonic_kernel_k1(%arg0: i32, %arg1: i32, %arg2: i32, %arg3: memref<16x128xf32, #tpu.memory_space<vmem>>, %arg4: memref<128x128xf32, #tpu.memory_space<vmem>>, %arg5: memref<2x128xf32, #tpu.memory_space<vmem>>, %arg6: memref<16x128xf32, #tpu.memory_space<vmem>>) attributes {dimension_semantics = [#tpu.dimension_semantics<parallel>, #tpu.dimension_semantics<parallel>, #tpu.dimension_semantics<arbitrary>], iteration_bounds = array<i64: 1, 1, 1>, scalar_prefetch = 0 : i64, scratch_operands = 0 : i64, tpu.core_type = #tpu.core_type<tc>, window_params = [{transform_indices = @transform_0, window_bounds = array<i64: 16, 128>}, {transform_indices = @transform_1, window_bounds = array<i64: 128, 128>}, {transform_indices = @transform_2, window_bounds = array<i64: 2, 128>}, {transform_indices = @transform_3, window_bounds = array<i64: 16, 128>}]} {
    %c0 = arith.constant 0 : index
    %c0_0 = arith.constant 0 : index
    %0 = vector.load %arg3[%c0, %c0_0] : memref<16x128xf32, #tpu.memory_space<vmem>>, vector<16x128xf32>
    %c0_1 = arith.constant 0 : index
    %c0_2 = arith.constant 0 : index
    %1 = vector.load %arg4[%c0_1, %c0_2] : memref<128x128xf32, #tpu.memory_space<vmem>>, vector<128x128xf32>
    %cst = arith.constant dense<0.000000e+00> : vector<16x128xf32>
    %2 = tpu.matmul %0, %1, %cst {dimension_numbers = #tpu.dot_dimension_numbers<[1], [0], [0], [1], [0, 0, 1, 1], [], []>} : vector<16x128xf32>, vector<128x128xf32>, vector<16x128xf32> -> vector<16x128xf32>
    %c0_3 = arith.constant 0 : index
    %c0_4 = arith.constant 0 : index
    %3 = vector.load %arg5[%c0_3, %c0_4] : memref<2x128xf32, #tpu.memory_space<vmem>>, vector<1x128xf32>
    %4 = vector.broadcast %3 : vector<1x128xf32> to vector<16x128xf32>
    %5 = arith.addf %2, %4 : vector<16x128xf32>
    %c1 = arith.constant 1 : index
    %c0_5 = arith.constant 0 : index
    %6 = vector.load %arg5[%c1, %c0_5] : memref<2x128xf32, #tpu.memory_space<vmem>>, vector<1x128xf32>
    %7 = vector.broadcast %6 : vector<1x128xf32> to vector<16x128xf32>
    %8 = arith.mulf %5, %7 : vector<16x128xf32>
    %9 = math.sin %8 : vector<16x128xf32>
    %cst_6 = arith.constant 1.000000e-01 : f32
    %10 = vector.broadcast %cst_6 : f32 to vector<16x128xf32>
    %11 = arith.mulf %10, %5 : vector<16x128xf32>
    %12 = arith.addf %9, %11 : vector<16x128xf32>
    %c0_7 = arith.constant 0 : index
    %c0_8 = arith.constant 0 : index
    %13 = vector.load %arg6[%c0_7, %c0_8] : memref<16x128xf32, #tpu.memory_space<vmem>>, vector<16x128xf32>
    tpu.vector_store %arg6[%c0_7, %c0_8], %12 {strides = array<i32>} : memref<16x128xf32, #tpu.memory_space<vmem>>, vector<16x128xf32>,
    return
  }
  func.func @transform_0(%arg0: i32, %arg1: i32, %arg2: i32) -> (i32, i32) {
    %c0_i32 = arith.constant 0 : i32
    return %arg0, %arg2 : i32, i32
  }
  func.func @transform_1(%arg0: i32, %arg1: i32, %arg2: i32) -> (i32, i32) {
    %c0_i32 = arith.constant 0 : i32
    return %arg2, %arg1 : i32, i32
  }
  func.func @transform_2(%arg0: i32, %arg1: i32, %arg2: i32) -> (i32, i32) {
    %c0_i32 = arith.constant 0 : i32
    %c0_i32_0 = arith.constant 0 : i32
    return %c0_i32, %arg1 : i32, i32
  }
  func.func @transform_3(%arg0: i32, %arg1: i32, %arg2: i32) -> (i32, i32) {
    %c0_i32 = arith.constant 0 : i32
    return %arg0, %arg1 : i32, i32
  }
}

</mosaic_0001>

<bundles_post_ra>
// kernel: tpu_custom_call.1
= control target key start
LH: loop header
LB: loop body
LE: loop exit
PB: predicated region body
PF: predicated region fallthrough
CT: control target
= control target key end

     0   :  { %8 = vsyncpa [#allocation3], 0  ;;  %s726_s0 = inlined_call_operand.hbm [shape: f32[16,128], index: 0, kind: input, shape index: {}]   ;;  %s727_s1 = inlined_call_operand.hbm [shape: f32[128,128], index: 1, kind: input, shape index: {}]   ;;  %s728_s2 = inlined_call_operand.vmem [shape: f32[2,128], index: 2, kind: input, shape index: {}]   ;;  %s729_s3 = inlined_call_operand.hbm [shape: f32[16,128], index: 3, kind: output, shape index: {}]  }
   0x1   :  { %9 = vsyncpa [#allocation6], 0 }
   0x2   :  { %10 = vsyncpa [#allocation4], 0  ;;  %s574_s12 = smov [#allocation2]   ;;  %s502_s16 = scalar_lea.hbm %s726_s0, 256 }
   0x3   :  { %s16_s13 = sshll.u32 %s574_s12, 4  ;;  %p503_p0 = scmp.ne.s32.totalorder %s726_s0, %s502_s16  ;;  %s17_s13 = int_to_ptr.vmem [resolvable:$true] %s16_s13 }
   0x4   :  { %p506_p1 = scmp.lt.u32.totalorder %s502_s16, %s726_s0 }
   0x6   :  { %p508_p2 = pnand %p506_p1, %p503_p0 }
   0x8   :  { %511 = shalt.err (!%p508_p2)
}
   0x9   :  { %s512_s21 = scalar_lea.vmem %s17_s13, 256  ;;  %p517_p4 = scmp.lt.s32.totalorder %s17_s13, %s17_s13 }
   0xa   :  { %p513_p3 = scmp.ne.s32.totalorder %s17_s13, %s512_s21  ;;  %p518_p5 = scmp.lt.s32.totalorder %s512_s21, %s512_s21 }
   0xc   :  { %p519_p6 = por %p518_p5, %p517_p4 }
   0xe   :  { %p520_p7 = pnand %p519_p6, %p513_p3 }
  0x10   :  { %523 = shalt.err (!%p520_p7)
}
  0x11   :  { %s575_s22 = smov 128   ;;  %s576_s23 = smov 8  }
  0x12   :  { %22 = dma.hbm_to_vmem [thread:$0]  %s726_s0, 256, %s17_s13, [#allocation3], %s575_s22, %s575_s22, %s576_s23  }
  0x13   :  { %s577_s26 = smov [#allocation5]   ;;  %s524_s30 = scalar_lea.hbm %s727_s1, 2048 }
  0x14   :  { %s28_s27 = sshll.u32 %s577_s26, 4  ;;  %p525_p8 = scmp.ne.s32.totalorder %s727_s1, %s524_s30  ;;  %s29_s27 = int_to_ptr.vmem [resolvable:$true] %s28_s27 }
  0x15   :  { %p528_p9 = scmp.lt.u32.totalorder %s524_s30, %s727_s1 }
  0x17   :  { %p530_p10 = pnand %p528_p9, %p525_p8 }
  0x19   :  { %533 = shalt.err (!%p530_p10)
}
  0x1a   :  { %s534_s8 = scalar_lea.vmem %s29_s27, 2048  ;;  %p539_p12 = scmp.lt.s32.totalorder %s29_s27, %s29_s27 }
  0x1b   :  { %p535_p11 = scmp.ne.s32.totalorder %s29_s27, %s534_s8  ;;  %p540_p13 = scmp.lt.s32.totalorder %s534_s8, %s534_s8 }
  0x1d   :  { %p541_p0 = por %p540_p13, %p539_p12 }
  0x1f   :  { %p542_p1 = pnand %p541_p0, %p535_p11 }
  0x21   :  { %545 = shalt.err (!%p542_p1)
}
  0x22   :  { %34 = dma.hbm_to_vmem [thread:$0]  %s727_s1, 2048, %s29_s27, [#allocation6], %s575_s22, %s575_s22, %s576_s23  }
  0x23   :  { %568 = dma.done.wait [#allocation3], 256  }
  0x24   :  { %569 = vsyncadd [#allocation3], 4294967040 }
  0x25   :  { %570 = dma.done.wait [#allocation6], 2048  }
  0x26   :  { %571 = vsyncadd [#allocation6], 4294965248  ;;  %v45_v0 = vld [vmem:[#allocation5] sm:$0xff]  ;;  %v46_v1 = vld [vmem:[#allocation5 + $0x8] sm:$0xff]  ;;  %v578_v54 = vmov 683565275  }
  0x27   :  { %v47_v2 = vld [vmem:[#allocation5 + $0x10] sm:$0xff]  ;;  %v443_v3 = vpack.c.bf16 %v46_v1, %v45_v0  ;;  %v48_v4 = vld [vmem:[#allocation5 + $0x18] sm:$0xff]  ;;  %v49_v6 = vld [vmem:[#allocation5 + $0x20] sm:$0xff]  ;;  %v579_v58 = vmov 2475754826  }
  0x28   :  { %v447_v5 = vpack.c.bf16 %v48_v4, %v47_v2  ;;  %v50_v7 = vld [vmem:[#allocation5 + $0x28] sm:$0xff]  ;;  %v43_v9 = vld [vmem:[#allocation2] sm:$0xff]  ;;  %v52_v11 = vld [vmem:[#allocation5 + $0x38] sm:$0xff]  ;;  %v580_v60 = vmov 2131351028  }
  0x29   :  { %444 = vmatprep.subr.bf16.mxu0 %v443_v3  ;;  %v451_v8 = vpack.c.bf16 %v50_v7, %v49_v6  ;;  %v51_v10 = vld [vmem:[#allocation5 + $0x30] sm:$0xff]  ;;  %440 = vmatprep.mubr.f32.mxu0 %v43_v9  ;;  %v53_v13 = vld [vmem:[#allocation5 + $0x40] sm:$0xff]  ;;  %v54_v14 = vld [vmem:[#allocation5 + $0x48] sm:$0xff]  ;;  %v581_v62 = vmov 2102212464  }
  0x2a   :  { %446 = vmatpush3.bf16.msra.mxu0 %v443_v3  ;;  %v455_v12 = vpack.c.bf16 %v52_v11, %v51_v10  ;;  %v459_v15 = vpack.c.bf16 %v54_v14, %v53_v13  ;;  %v55_v16 = vld [vmem:[#allocation5 + $0x50] sm:$0xff]  ;;  %v56_v17 = vld [vmem:[#allocation5 + $0x58] sm:$0xff]  ;;  %v57_v19 = vld [vmem:[#allocation5 + $0x60] sm:$0xff]  ;;  %v582_v0 = vmov 920167782  }
  0x2b   :  { %448 = vmatprep.subr.bf16.mxu0 %v447_v5  ;;  %v463_v18 = vpack.c.bf16 %v56_v17, %v55_v16  ;;  %v58_v20 = vld [vmem:[#allocation5 + $0x68] sm:$0xff]  ;;  %v59_v22 = vld [vmem:[#allocation5 + $0x70] sm:$0xff]  ;;  %v60_v23 = vld [vmem:[#allocation5 + $0x78] sm:$0xff]  ;;  %v583_v7 = vmov 1326507024  }
  0x2c   :  { %v467_v21 = vpack.c.bf16 %v58_v20, %v57_v19  ;;  %v471_v24 = vpack.c.bf16 %v60_v23, %v59_v22  ;;  %v44_v25 = vld [vmem:[#allocation2 + $0x8] sm:$0xff]  ;;  %v380_v26 = vld [vmem:[%s728_s2] ss:$0 sm:$0xff]  ;;  %v381_v28 = vld [vmem:[%s728_s2 + $0x1] ss:$0 sm:$0xff]  ;;  %s584_s2 = smov [#allocation7]  }
  0x2d   :  { %s367_s13 = sshll.u32 %s584_s2, 4  ;;  %s368_s13 = int_to_ptr.vmem [resolvable:$true] %s367_s13 }
  0x2e   :  { %450 = vmatpush3.bf16.msra.mxu0 %v447_v5  ;;  %s546_s14 = scalar_lea.vmem %s368_s13, 256  ;;  %p551_p3 = scmp.lt.s32.totalorder %s368_s13, %s368_s13 }
  0x2f   :  { %452 = vmatprep.subr.bf16.mxu0 %v451_v8  ;;  %p547_p2 = scmp.ne.s32.totalorder %s368_s13, %s546_s14  ;;  %p552_p4 = scmp.lt.s32.totalorder %s546_s14, %s546_s14 }
  0x31   :  { %p553_p5 = por %p552_p4, %p551_p3 }
  0x32   :  { %454 = vmatpush3.bf16.msra.mxu0 %v451_v8 }
  0x33   :  { %456 = vmatprep.subr.bf16.mxu0 %v455_v12  ;;  %p554_p6 = pnand %p553_p5, %p547_p2 }
  0x36   :  { %458 = vmatpush3.bf16.msra.mxu0 %v455_v12 }
  0x37   :  { %460 = vmatprep.subr.bf16.mxu0 %v459_v15 }
  0x3a   :  { %462 = vmatpush3.bf16.msra.mxu0 %v459_v15 }
  0x3b   :  { %464 = vmatprep.subr.bf16.mxu0 %v463_v18 }
  0x3e   :  { %466 = vmatpush3.bf16.msra.mxu0 %v463_v18 }
  0x3f   :  { %468 = vmatprep.subr.bf16.mxu0 %v467_v21 }
  0x42   :  { %470 = vmatpush3.bf16.msra.mxu0 %v467_v21 }
  0x43   :  { %472 = vmatprep.subr.bf16.mxu0 %v471_v24 }
  0x46   :  { %474 = vmatpush3.bf16.msra.mxu0 %v471_v24 }
  0x49   :  { %441 = vmatmul.mubr.f32.vlgmr.msra.gmra.mrb[0].mxu0 %v44_v25 }
 0x11c   :  { %v442_v27 = vpop.f32.mrb[0].mxu0 }
 0x11d   :  { %v641_v29 = vadd.f32 %v442_v27, %v380_v26  ;;  %v132_v30 = vpop.f32.mrb[1].mxu0 }
 0x11e   :  { %v643_v31 = vadd.f32 %v380_v26, %v132_v30 }
 0x11f   :  { %v646_v32 = vmul.f32 %v381_v28, %v641_v29 }
 0x120   :  { %v649_v33 = vmul.f32 %v381_v28, %v643_v31 }
 0x121   :  { %v252_v34 = vand.u32 2147483647, %v646_v32  ;;  %v255_v35 = vand.u32 2139095040, %v646_v32  ;;  %vm254_vm14 = vcmp.lt.s32.totalorder %v646_v32, 0 }
 0x122   :  { %v151_v36 = vand.u32 2139095040, %v649_v33  ;;  %v148_v39 = vand.u32 2147483647, %v649_v33 }
 0x123   :  { %v256_v37 = vshrl.u32 %v255_v35, 23  ;;  %v259_v38 = vand.u32 8388607, %v252_v34  ;;  %vm253_vm15 = vcmp.le.f32.partialorder %v252_v34, 0.7853982 }
 0x124   :  { %v152_v40 = vshrl.u32 %v151_v36, 23  ;;  %v659_v45 = vand.u32 8388607, %v148_v39 }
 0x125   :  { %v386_v41 = vadd.s32 4294967169, %v256_v37  ;;  %v260_v44 = vor.u32 8388608, %v259_v38 }
 0x126   :  { %v382_v42 = vadd.s32 4294967169, %v152_v40  ;;  %v156_v52 = vor.u32 8388608, %v659_v45 }
 0x127   :  { %v262_v43 = vadd.s32 1, %v386_v41  ;;  %v661_v51 = vshll.u32 %v260_v44, 8 }
 0x128   :  { %v158_v46 = vadd.s32 1, %v382_v42 }
 0x129   :  { %vm263_vm0 = vcmp.gt.s32.totalorder %v262_v43, 0 }
 0x12a   :  { %v264_v47 = vsel %vm263_vm0, %v262_v43, 0  ;;  %vm159_vm1 = vcmp.gt.s32.totalorder %v158_v46, 0  ;;  %vm150_vm0 = vcmp.lt.s32.totalorder %v649_v33, 0 }
 0x12b   :  { %v265_v48 = vshrl.u32 %v264_v47, 5  ;;  %v266_v49 = vand.u32 31, %v264_v47  ;;  %v160_v50 = vsel %vm159_vm1, %v158_v46, 0  ;;  %vm149_vm1 = vcmp.le.f32.partialorder %v148_v39, 0.7853982 }
 0x12c   :  { %v664_v56 = vshrl.u32 %v160_v50, 5  ;;  %v162_v57 = vand.u32 31, %v160_v50 }
 0x12d   :  { %v267_v53 = vsub.s32 32, %v266_v49  ;;  %v269_v55 = vshll.u32 %v578_v54, %v266_v49  ;;  %v272_v59 = vshll.u32 %v579_v58, %v266_v49  ;;  %v275_v61 = vshll.u32 %v580_v60, %v266_v49 }
 0x12e   :  { %v278_v63 = vshll.u32 %v581_v62, %v266_v49  ;;  %v281_v1 = vshll.u32 %v582_v0, %v266_v49  ;;  %vm284_vm2 = vcmp.lt.s32.totalorder %v265_v48, 1  ;;  %vm285_vm3 = vcmp.lt.s32.totalorder %v265_v48, 2 }
 0x12f   :  { %v270_v2 = vshrl.u32 %v579_v58, %v267_v53  ;;  %v273_v3 = vshrl.u32 %v580_v60, %v267_v53  ;;  %v276_v4 = vshrl.u32 %v581_v62, %v267_v53  ;;  %v268_v5 = vshrl.u32 %v578_v54, %v267_v53 }
 0x130   :  { %v279_v6 = vshrl.u32 %v582_v0, %v267_v53  ;;  %v282_v8 = vshrl.u32 %v583_v7, %v267_v53  ;;  %v163_v12 = vsub.s32 32, %v162_v57  ;;  %vm286_vm4 = vcmp.lt.s32.totalorder %v265_v48, 3 }
 0x131   :  { %v271_v9 = vor.u32 %v270_v2, %v269_v55  ;;  %v274_v10 = vor.u32 %v273_v3, %v272_v59  ;;  %v277_v11 = vor.u32 %v276_v4, %v275_v61  ;;  %vm287_vm5 = vcmp.lt.s32.totalorder %v265_v48, 4 }
 0x132   :  { %v280_v13 = vor.u32 %v279_v6, %v278_v63  ;;  %v283_v14 = vor.u32 %v282_v8, %v281_v1  ;;  %v165_v22 = vshll.u32 %v578_v54, %v162_v57  ;;  %v166_v25 = vshrl.u32 %v579_v58, %v163_v12 }
 0x133   :  { %v288_v15 = vsel %vm284_vm2, %v268_v5, %v271_v9  ;;  %v289_v16 = vsel %vm287_vm5, %v277_v11, 2102212464  ;;  %v292_v17 = vsel %vm284_vm2, %v271_v9, %v274_v10  ;;  %v296_v18 = vsel %vm284_vm2, %v274_v10, %v277_v11 }
 0x134   :  { %v290_v19 = vsel %vm286_vm4, %v274_v10, %v289_v16  ;;  %v293_v20 = vsel %vm287_vm5, %v280_v13, 920167782  ;;  %v297_v21 = vsel %vm287_vm5, %v283_v14, 1326507024  ;;  %v168_v26 = vshll.u32 %v579_v58, %v162_v57 }
 0x135   :  { %v294_v23 = vsel %vm286_vm4, %v277_v11, %v293_v20  ;;  %v298_v24 = vsel %vm286_vm4, %v280_v13, %v297_v21  ;;  %v291_v27 = vsel %vm285_vm3, %v288_v15, %v290_v19  ;;  %v169_v35 = vshrl.u32 %v580_v60, %v163_v12 }
 0x136   :  { %v295_v28 = vsel %vm285_vm3, %v292_v17, %v294_v23  ;;  %v299_v30 = vsel %vm285_vm3, %v296_v18, %v298_v24  ;;  %v167_v41 = vor.u32 %v166_v25, %v165_v22  ;;  %v171_v43 = vshll.u32 %v580_v60, %v162_v57 }
 0x137   :  { %v673_v36 = vmul.u32.u64.low %v661_v51, %v299_v30  ;;  %v674_v37 = vmul.u32.u64.high %v661_v51, %v299_v30, %v673_v36  ;;  %v677_v38 = vmul.u32.u64.low %v661_v51, %v295_v28  ;;  %v678_v40 = vmul.u32.u64.high %v661_v51, %v295_v28, %v677_v38 }
 0x138   :  { %v170_v42 = vor.u32 %v169_v35, %v168_v26  ;;  %v172_v44 = vshrl.u32 %v581_v62, %v163_v12  ;;  %v174_v45 = vshll.u32 %v581_v62, %v162_v57  ;;  %v175_v46 = vshrl.u32 %v582_v0, %v163_v12 }
 0x139   :  { %v178_v47 = vshrl.u32 %v583_v7, %v163_v12  ;;  %v196_v49 = vshll.u32 %v156_v52, 8  ;;  %v307_v48 = vmul.u32 %v661_v51, %v291_v27  ;;  %v164_v50 = vshrl.u32 %v578_v54, %v163_v12 }
 0x13a   :  { %v173_v53 = vor.u32 %v172_v44, %v171_v43  ;;  %v177_v55 = vshll.u32 %v582_v0, %v162_v57  ;;  %vm309_vm6 = vc.u32 %v674_v37, %v677_v38  ;;  %v310_v58 = vadd.s32 1, %v678_v40 }
 0x13b   :  { %v176_v59 = vor.u32 %v175_v46, %v174_v45  ;;  %vm180_vm7 = vcmp.lt.s32.totalorder %v664_v56, 1  ;;  %vm182_vm8 = vcmp.lt.s32.totalorder %v664_v56, 3  ;;  %vm183_vm9 = vcmp.lt.s32.totalorder %v664_v56, 4 }
 0x13c   :  { %v179_v61 = vor.u32 %v178_v47, %v177_v55  ;;  %v188_v60 = vsel %vm180_vm7, %v167_v41, %v170_v42  ;;  %v311_v52 = vsel %vm309_vm6, %v310_v58, %v678_v40  ;;  %v185_v62 = vsel %vm183_vm9, %v173_v53, 2102212464 }
 0x13d   :  { %v189_v51 = vsel %vm183_vm9, %v176_v59, 920167782  ;;  %v192_v54 = vsel %vm180_vm7, %v170_v42, %v173_v53  ;;  %v312_v63 = vadd.s32 %v311_v52, %v307_v48  ;;  %vm181_vm10 = vcmp.lt.s32.totalorder %v664_v56, 2 }
 0x13e   :  { %v190_v57 = vsel %vm182_vm8, %v173_v53, %v189_v51  ;;  %v193_v0 = vsel %vm183_vm9, %v179_v61, 1326507024  ;;  %v184_v1 = vsel %vm180_vm7, %v164_v50, %v167_v41  ;;  %v186_v2 = vsel %vm182_vm8, %v170_v42, %v185_v62 }
 0x13f   :  { %v191_v3 = vsel %vm181_vm10, %v188_v60, %v190_v57  ;;  %v194_v4 = vsel %vm182_vm8, %v176_v59, %v193_v0  ;;  %v313_v5 = vadd.s32 536870912, %v312_v63  ;;  %v187_v12 = vsel %vm181_vm10, %v184_v1, %v186_v2 }
 0x140   :  { %v195_v6 = vsel %vm181_vm10, %v192_v54, %v194_v4  ;;  %v688_v7 = vmul.u32.u64.low %v196_v49, %v191_v3  ;;  %v689_v8 = vmul.u32.u64.high %v196_v49, %v191_v3, %v688_v7  ;;  %v203_v56 = vmul.u32 %v196_v49, %v187_v12 }
 0x141   :  { %v691_v9 = vmul.u32.u64.low %v196_v49, %v195_v6  ;;  %v692_v10 = vmul.u32.u64.high %v196_v49, %v195_v6, %v691_v9  ;;  %v314_v11 = vshrl.u32 %v313_v5, 30  ;;  %v308_v28 = vadd.s32 %v677_v38, %v674_v37 }
 0x142   :  { %v206_v14 = vadd.s32 1, %v689_v8  ;;  %vm344_vm5 = vweird.f32 %v646_v32  ;;  %vm240_vm9 = vweird.f32 %v649_v33 }
 0x143   :  { %v315_v13 = vshll.u32 %v314_v11, 30  ;;  %vm205_vm11 = vc.u32 %v692_v10, %v688_v7  ;;  %v204_v53 = vadd.s32 %v688_v7, %v692_v10  ;;  %v338_v38 = vsub.s32 4, %v314_v11 }
 0x144   :  { %v207_v16 = vsel %vm205_vm11, %v206_v14, %v689_v8 }
 0x145   :  { %v316_v15 = vsub.s32 %v312_v63, %v315_v13  ;;  %v208_v17 = vadd.s32 %v207_v16, %v203_v56  ;;  %v339_v63 = vsel %vm254_vm14, %v338_v38, %v314_v11 }
 0x146   :  { %v341_v1 = vsel %vm253_vm15, 0, %v339_v63 }
 0x147   :  { %v318_v18 = vsub.s32 0, %v316_v15  ;;  %v209_v19 = vadd.s32 536870912, %v208_v17  ;;  %v345_v6 = vadd.s32 3, %v341_v1 }
 0x149   :  { %v387_v20 = vmin.u32 %v318_v18, %v316_v15  ;;  %v210_v21 = vshrl.u32 %v209_v19, 30  ;;  %v346_v9 = vand.u32 3, %v345_v6  ;;  %v357_v18 = vmul.f32 0.1, %v641_v29 }
 0x14a   :  { %v356_v29 = vmul.f32 0.1, %v643_v31 }
 0x14b   :  { %v320_v22 = vclz %v387_v20  ;;  %v211_v23 = vshll.u32 %v210_v21, 30  ;;  %v234_v5 = vsub.s32 4, %v210_v21  ;;  %vm351_vm2 = vcmp.eq.s32.totalorder %v346_v9, 2 }
 0x14c   :  { %vm348_vm3 = vcmp.eq.s32.totalorder %v346_v9, 0  ;;  %vm347_vm4 = vcmp.lt.s32.totalorder %v346_v9, 2 }
 0x14d   :  { %v388_v24 = vadd.s32 4294967294, %v320_v22  ;;  %v212_v25 = vsub.s32 %v208_v17, %v211_v23  ;;  %v235_v8 = vsel %vm150_vm0, %v234_v5, %v210_v21 }
 0x14e   :  { %v237_v12 = vsel %vm149_vm1, 0, %v235_v8 }
 0x14f   :  { %vm389_vm12 = vcmp.lt.s32.totalorder %v388_v24, 0  ;;  %v214_v27 = vsub.s32 0, %v212_v25  ;;  %v241_v16 = vadd.s32 3, %v237_v12 }
 0x150   :  { %v323_v26 = vsel %vm389_vm12, 0, %v388_v24 }
 0x151   :  { %v324_v30 = vsub.s32 32, %v323_v26  ;;  %v328_v35 = vsub.s32 4294967266, %v323_v26  ;;  %v383_v36 = vmin.u32 %v214_v27, %v212_v25  ;;  %v325_v40 = vshll.u32 %v316_v15, %v323_v26 }
 0x152   :  { %v242_v21 = vand.u32 3, %v241_v16 }
 0x153   :  { %v326_v41 = vshrl.u32 %v308_v28, %v324_v30  ;;  %v329_v42 = vadd.s32 127, %v328_v35  ;;  %v216_v43 = vclz %v383_v36 }
 0x154   :  { %vm247_vm6 = vcmp.eq.s32.totalorder %v242_v21, 2  ;;  %vm244_vm7 = vcmp.eq.s32.totalorder %v242_v21, 0  ;;  %vm243_vm8 = vcmp.lt.s32.totalorder %v242_v21, 2 }
 0x155   :  { %v327_v44 = vor.u32 %v326_v41, %v325_v40  ;;  %v330_v45 = vshll.u32 %v329_v42, 23  ;;  %v384_v46 = vadd.s32 4294967294, %v216_v43 }
 0x157   :  { %v331_v47 = vor.u32 4788187, %v330_v45  ;;  %vm385_vm13 = vcmp.lt.s32.totalorder %v384_v46, 0  ;;  %v334_v48 = vcvt.s32.f32 %v327_v44 }
 0x158   :  { %v219_v50 = vsel %vm385_vm13, 0, %v384_v46 }
 0x159   :  { %v332_v49 = vand.u32 2147483647, %v331_v47  ;;  %v220_v55 = vsub.s32 32, %v219_v50  ;;  %v224_v58 = vsub.s32 4294967266, %v219_v50  ;;  %v221_v59 = vshll.u32 %v212_v25, %v219_v50 }
 0x15b   :  { %v335_v37 = vmul.f32 %v334_v48, %v332_v49  ;;  %v222_v61 = vshrl.u32 %v204_v53, %v220_v55  ;;  %v225_v60 = vadd.s32 127, %v224_v58 }
 0x15d   :  { %v336_v52 = vxor.u32 2147483648, %v335_v37  ;;  %v223_v62 = vor.u32 %v222_v61, %v221_v59  ;;  %v226_v51 = vshll.u32 %v225_v60, 23 }
 0x15f   :  { %v337_v54 = vsel %vm254_vm14, %v336_v52, %v335_v37  ;;  %v227_v0 = vor.u32 4788187, %v226_v51  ;;  %v230_v3 = vcvt.s32.f32 %v223_v62 }
 0x160   :  { %v340_v57 = vsel %vm253_vm15, %v646_v32, %v337_v54 }
 0x161   :  { %494 = vcosq.f32 %v340_v57  ;;  %v228_v2 = vand.u32 2147483647, %v227_v0 }
 0x162   :  { %496 = vsinq.f32 %v340_v57 }
 0x163   :  { %v231_v4 = vmul.f32 %v230_v3, %v228_v2 }
 0x165   :  { %v232_v7 = vxor.u32 2147483648, %v231_v4 }
 0x167   :  { %v233_v34 = vsel %vm150_vm0, %v232_v7, %v231_v4 }
 0x168   :  { %v236_v10 = vsel %vm149_vm1, %v649_v33, %v233_v34 }
 0x169   :  { %498 = vcosq.f32 %v236_v10 }
 0x16a   :  { %500 = vsinq.f32 %v236_v10 }
 0x16b   :  { %v495_v11 = vpop.eup %494 }
 0x16c   :  { %v497_v13 = vpop.eup %496  ;;  %v352_v14 = vxor.u32 2147483648, %v495_v11 }
 0x16d   :  { %v349_v56 = vxor.u32 2147483648, %v497_v13 }
 0x16e   :  { %v353_v15 = vsel %vm351_vm2, %v352_v14, %v497_v13 }
 0x16f   :  { %v350_v17 = vsel %vm348_vm3, %v495_v11, %v349_v56 }
 0x170   :  { %v354_v39 = vsel %vm347_vm4, %v350_v17, %v353_v15 }
 0x171   :  { %v355_v19 = vsel %vm344_vm5, nan, %v354_v39 }
 0x172   :  { %v359_v20 = vadd.f32 %v357_v18, %v355_v19 }
 0x173   :  { %v499_v22 = vpop.eup %498 }
 0x174   :  { %361 = vst [vmem:[#allocation7 + $0x8] sm:$0xff] %v359_v20  ;;  %v501_v23 = vpop.eup %500  ;;  %v248_v24 = vxor.u32 2147483648, %v499_v22 }
 0x175   :  { %v245_v25 = vxor.u32 2147483648, %v501_v23 }
 0x176   :  { %v249_v26 = vsel %vm247_vm6, %v248_v24, %v501_v23 }
 0x177   :  { %v246_v27 = vsel %vm244_vm7, %v499_v22, %v245_v25 }
 0x178   :  { %v250_v32 = vsel %vm243_vm8, %v246_v27, %v249_v26 }
 0x179   :  { %v251_v28 = vsel %vm240_vm9, nan, %v250_v32 }
 0x17a   :  { %v358_v30 = vadd.f32 %v356_v29, %v251_v28 }
 0x17c   :  { %360 = vst [vmem:[#allocation7] sm:$0xff] %v358_v30 }
 0x17d   :  { %557 = shalt.err (!%p554_p6)
}
 0x17e   :  { %s558_s17 = scalar_lea.hbm %s729_s3, 256 }
 0x17f   :  { %p559_p7 = scmp.ne.s32.totalorder %s729_s3, %s558_s17  ;;  %p562_p8 = scmp.lt.u32.totalorder %s558_s17, %s729_s3 }
 0x181   :  { %p564_p9 = pnand %p562_p8, %p559_p7 }
 0x183   :  { %567 = shalt.err (!%p564_p9)
}
 0x184   :  { %373 = dma.vmem_to_hbm [thread:$0]  %s368_s13, 256, %s729_s3, [#allocation4], %s575_s22, %s575_s22, %s576_s23  }
 0x185   :  { %572 = dma.done.wait [#allocation4], 256  }
 0x186   :  { %573 = vsyncadd [#allocation4], 4294967040 }
 0x187   :  { %377 = vsyncpa [#allocation3], 1 }
 0x188   :  { %378 = vsyncpa [#allocation6], 1 }
 0x189   :  { %379 = vsyncpa [#allocation4], 1 }

</bundles_post_ra>
